<compile_context>
chip_gen: v7x
topology: tpu7x:2x2x1
jax: 0.10.0
libtpu: 0.0.40
codegen_flags: <defaults>
</compile_context>

<pallas_src>
import functools

import jax
import jax.numpy as jnp
from jax import lax
from jax.experimental import pallas as pl
from jax.experimental.pallas import tpu as pltpu


def _layernorm_kernel(x_ref, gamma_ref, beta_ref, o_ref, *, eps, num_segments,
                      seg_width):
    """One row block.  x_ref: (tile_rows, W), W = num_segments * seg_width.

    num_segments == 1 -> plain per-row LayerNorm over the last axis.
    num_segments  > 1 -> `num_segments` original rows are packed side by side
    along the lane axis; per-segment mean/var use masked full-row reductions.
    """
    x = x_ref[...].astype(jnp.float32)

    if num_segments == 1:
        mean = jnp.mean(x, axis=-1, keepdims=True)
        centered = x - mean
        var = jnp.mean(centered * centered, axis=-1, keepdims=True)
    else:
        inv_w = 1.0 / float(seg_width)
        width = x.shape[-1]
        lane = lax.broadcasted_iota(jnp.int32, (1, width), 1)
        mean = jnp.zeros_like(x)
        for s in range(num_segments):
            m = jnp.logical_and(lane >= s * seg_width,
                                lane < (s + 1) * seg_width).astype(jnp.float32)
            ssum = jnp.sum(x * m, axis=-1, keepdims=True)        # (T, 1)
            mean = mean + m * (ssum * inv_w)                     # bcast (1,W)*(T,1)
        centered = x - mean
        c2 = centered * centered
        var = jnp.zeros_like(x)
        for s in range(num_segments):
            m = jnp.logical_and(lane >= s * seg_width,
                                lane < (s + 1) * seg_width).astype(jnp.float32)
            vsum = jnp.sum(c2 * m, axis=-1, keepdims=True)
            var = var + m * (vsum * inv_w)

    inv_std = lax.rsqrt(var + eps)            # EUP slot: effectively free
    y = centered * inv_std
    gamma = gamma_ref[...].astype(jnp.float32)
    beta = beta_ref[...].astype(jnp.float32)
    o_ref[...] = (gamma * y + beta).astype(o_ref.dtype)


def _chip_params():
    """(vmem_capacity_bytes, per-block byte target, min grid steps)."""
    vmem = 64 << 20  # conservative (v7x-sized) default
    try:
        vmem = int(pltpu.get_tpu_info().vmem_capacity_bytes)
    except Exception:
        pass
    kind = ""
    try:
        kind = jax.devices()[0].device_kind.lower()
    except Exception:
        pass
    is_v7 = ("v7" in kind) or ("7x" in kind)
    block_target = (8 << 20) if is_v7 else (4 << 20)   # ~4 MiB v5e/v6e, ~8 MiB v7x
    min_steps = 4 if is_v7 else 2                      # >=2 steps per TensorCore
    return vmem, block_target, min_steps


def _select_tile_rows(rows, width, in_dtype, out_dtype, vmem_bytes,
                      block_target, min_steps):
    """Largest sublane-aligned row tile hitting the byte target within VMEM."""
    in_b = jnp.dtype(in_dtype).itemsize
    out_b = jnp.dtype(out_dtype).itemsize
    sublane = {4: 8, 2: 16, 1: 32}.get(in_b, 8)

    # Footprint per row: double-buffered input + output, ~4 live f32 tiles.
    fp_per_row = width * (2 * in_b + 2 * out_b + 4 * 4)
    rows_by_budget = int(vmem_bytes * 0.6) // max(fp_per_row, 1)
    rows_by_target = block_target // max(width * in_b, 1)
    max_rows = max(min(rows_by_budget, rows_by_target), sublane)
    max_rows = max((max_rows // sublane) * sublane, sublane)

    # Aim for >= min_steps grid steps so megacore parts get pipelined work.
    per_step = -(-rows // min_steps)
    per_step = -(-per_step // sublane) * sublane

    tile = min(max_rows, per_step)
    if tile >= rows:
        return rows            # single full-extent block (block dim == array dim)
    return max(tile, sublane)


def layer_norm(x, gamma, beta, *, eps=1e-5, tile_rows=None):
    """LayerNorm over the trailing gamma.shape dims. x: (..., *param_shape)."""
    orig_shape = x.shape
    norm_ndim = max(gamma.ndim, 1)
    hidden = 1
    for d in orig_shape[len(orig_shape) - norm_ndim:]:
        hidden *= int(d)
    rows = 1
    for d in orig_shape[:len(orig_shape) - norm_ndim]:
        rows *= int(d)

    # Lane-dense packing for narrow hidden dims: pack `pack` consecutive rows
    # along the lane axis so loads/stores use full 128-lane vregs.
    pack = 1
    if hidden < 128 and 128 % hidden == 0:
        k = min(128 // hidden, 16)
        if k > 1 and rows % k == 0 and rows > 0:
            pack = k
    # TODO(synk): hidden that doesn't divide 128 (or ragged row counts) still
    # takes the masked-lane path; generalized packing would need per-block
    # segment offsets.

    width = hidden * pack
    prow = max(rows // max(pack, 1), 1) if rows else 0
    if rows == 0:
        return x

    x2d = x.reshape(prow, width)
    gamma1 = gamma.reshape(1, hidden)
    beta1 = beta.reshape(1, hidden)
    if pack > 1:
        gamma1 = jnp.tile(gamma1, (1, pack))
        beta1 = jnp.tile(beta1, (1, pack))

    vmem_bytes, block_target, min_steps = _chip_params()
    if tile_rows is None:
        tile_rows = _select_tile_rows(prow, width, x.dtype, x.dtype,
                                      vmem_bytes, block_target, min_steps)
    tile_rows = max(1, min(int(tile_rows), prow))

    # Ragged last block handled by Pallas (OOB writes masked); no host pad.
    grid = (pl.cdiv(prow, tile_rows),)

    in_b = jnp.dtype(x.dtype).itemsize
    est = tile_rows * width * (2 * in_b + 2 * in_b + 4 * 4) + 4 * width * 4
    vmem_limit = int(min(vmem_bytes * 0.9,
                         max(est * 5 // 4 + (2 << 20), 16 << 20)))

    kernel = functools.partial(_layernorm_kernel, eps=eps,
                               num_segments=pack, seg_width=hidden)

    out2d = pl.pallas_call(
        kernel,
        out_shape=jax.ShapeDtypeStruct((prow, width), x.dtype),
        grid_spec=pltpu.PrefetchScalarGridSpec(
            num_scalar_prefetch=0,
            grid=grid,
            in_specs=[
                pl.BlockSpec((tile_rows, width), lambda i: (i, 0)),
                pl.BlockSpec((1, width), lambda i: (0, 0)),
                pl.BlockSpec((1, width), lambda i: (0, 0)),
            ],
            out_specs=pl.BlockSpec((tile_rows, width), lambda i: (i, 0)),
        ),
        compiler_params=pltpu.CompilerParams(
            dimension_semantics=("parallel",),
            vmem_limit_bytes=vmem_limit,
        ),
    )(x2d, gamma1, beta1)

    return out2d.reshape(orig_shape)


def layer_norm_ref(x, gamma, beta, eps=1e-5):
    x32 = x.astype(jnp.float32)
    mean = jnp.mean(x32, axis=-1, keepdims=True)
    var = jnp.mean((x32 - mean) ** 2, axis=-1, keepdims=True)
    std = jnp.sqrt(var + eps)
    y = (x32 - mean) / std
    return (gamma * y + beta).astype(x.dtype)


if __name__ == "__main__":
    batch, seq, hidden = 2, 8, 32
    key = jax.random.PRNGKey(0)
    k1, k2, k3, k4 = jax.random.split(key, 4)

    x = jax.random.normal(k1, (batch, seq, hidden), dtype=jnp.float32)
    # Deterministic parameter init matching nn.Parameter(torch.ones/zeros(...)).
    gamma = jnp.ones((hidden,), dtype=jnp.float32)
    beta = jnp.zeros((hidden,), dtype=jnp.float32)

    out = jax.block_until_ready(layer_norm(x, gamma, beta, eps=1e-5))
    ref = layer_norm_ref(x, gamma, beta, eps=1e-5)
    assert out.shape == x.shape
    assert jnp.allclose(out, ref, atol=1e-5, rtol=1e-5), "mismatch vs reference"

    # Ragged row count (21 rows): exercises the cdiv grid with a masked last
    # block and the non-packed fallback path (rows % pack != 0).
    x2 = jax.random.normal(k2, (3, 7, hidden), dtype=jnp.float32)
    out2 = jax.block_until_ready(layer_norm(x2, gamma, beta, eps=1e-5))
    ref2 = layer_norm_ref(x2, gamma, beta, eps=1e-5)
    assert jnp.allclose(out2, ref2, atol=1e-5, rtol=1e-5), "ragged mismatch vs reference"

    # Larger row count + non-trivial gamma/beta: exercises lane-dense packing
    # (4 rows per 128-lane vreg) across multiple grid steps.
    x3 = jax.random.normal(k3, (4, 96, hidden), dtype=jnp.float32)
    gamma3 = 1.0 + 0.1 * jax.random.normal(k4, (hidden,), dtype=jnp.float32)
    beta3 = 0.1 * jnp.ones((hidden,), dtype=jnp.float32)
    out3 = jax.block_until_ready(layer_norm(x3, gamma3, beta3, eps=1e-5))
    ref3 = layer_norm_ref(x3, gamma3, beta3, eps=1e-5)
    assert jnp.allclose(out3, ref3, atol=1e-5, rtol=1e-5), "packed mismatch vs reference"

    print("KERNEL_OK")
</pallas_src>

<mosaic_0001>
module attributes {stable_mosaic.version = 11 : i64} {
  func.func @_layernorm_kernel(%arg0: i32, %arg1: memref<4x128xf32, #tpu.memory_space<vmem>>, %arg2: memref<1x128xf32, #tpu.memory_space<vmem>>, %arg3: memref<1x128xf32, #tpu.memory_space<vmem>>, %arg4: memref<4x128xf32, #tpu.memory_space<vmem>>) attributes {dimension_semantics = [#tpu.dimension_semantics<parallel>], iteration_bounds = array<i64: 1>, scalar_prefetch = 0 : i64, scratch_operands = 0 : i64, tpu.core_type = #tpu.core_type<tc>, window_params = [{transform_indices = @transform_0, window_bounds = array<i64: 4, 128>}, {pipeline_mode = #tpu.pipeline_mode<synchronous>, transform_indices = @transform_1, window_bounds = array<i64: 1, 128>}, {pipeline_mode = #tpu.pipeline_mode<synchronous>, transform_indices = @transform_2, window_bounds = array<i64: 1, 128>}, {transform_indices = @transform_3, window_bounds = array<i64: 4, 128>}]} {
    %c0 = arith.constant 0 : index
    %c0_0 = arith.constant 0 : index
    %0 = vector.load %arg1[%c0, %c0_0] : memref<4x128xf32, #tpu.memory_space<vmem>>, vector<4x128xf32>
    %1 = tpu.iota {dimensions = array<i32: 1>} : vector<1x128xi32>
    %cst = arith.constant 0.000000e+00 : f32
    %2 = vector.broadcast %cst : f32 to vector<4x128xf32>
    %c0_i32 = arith.constant 0 : i32
    %3 = vector.broadcast %c0_i32 : i32 to vector<1x128xi32>
    %4 = arith.cmpi sge, %1, %3 : vector<1x128xi32>
    %c32_i32 = arith.constant 32 : i32
    %5 = vector.broadcast %c32_i32 : i32 to vector<1x128xi32>
    %6 = arith.cmpi slt, %1, %5 : vector<1x128xi32>
    %7 = arith.andi %4, %6 : vector<1x128xi1>
    %8 = arith.extui %7 : vector<1x128xi1> to vector<1x128xi32>
    %9 = arith.sitofp %8 : vector<1x128xi32> to vector<1x128xf32>
    %10 = vector.broadcast %9 : vector<1x128xf32> to vector<4x128xf32>
    %11 = arith.mulf %0, %10 : vector<4x128xf32>
    %cst_1 = arith.constant dense<0.000000e+00> : vector<4xf32>
    %12 = vector.multi_reduction <add>, %11, %cst_1 [1] : vector<4x128xf32> to vector<4xf32>
    %13 = vector.shape_cast %12 : vector<4xf32> to vector<4x1xf32>
    %cst_2 = arith.constant 3.125000e-02 : f32
    %14 = vector.broadcast %cst_2 : f32 to vector<4x1xf32>
    %15 = arith.mulf %13, %14 : vector<4x1xf32>
    %16 = vector.broadcast %9 : vector<1x128xf32> to vector<4x128xf32>
    %17 = vector.broadcast %15 : vector<4x1xf32> to vector<4x128xf32>
    %18 = arith.mulf %16, %17 : vector<4x128xf32>
    %19 = arith.addf %2, %18 : vector<4x128xf32>
    %c32_i32_3 = arith.constant 32 : i32
    %20 = vector.broadcast %c32_i32_3 : i32 to vector<1x128xi32>
    %21 = arith.cmpi sge, %1, %20 : vector<1x128xi32>
    %c64_i32 = arith.constant 64 : i32
    %22 = vector.broadcast %c64_i32 : i32 to vector<1x128xi32>
    %23 = arith.cmpi slt, %1, %22 : vector<1x128xi32>
    %24 = arith.andi %21, %23 : vector<1x128xi1>
    %25 = arith.extui %24 : vector<1x128xi1> to vector<1x128xi32>
    %26 = arith.sitofp %25 : vector<1x128xi32> to vector<1x128xf32>
    %27 = vector.broadcast %26 : vector<1x128xf32> to vector<4x128xf32>
    %28 = arith.mulf %0, %27 : vector<4x128xf32>
    %cst_4 = arith.constant dense<0.000000e+00> : vector<4xf32>
    %29 = vector.multi_reduction <add>, %28, %cst_4 [1] : vector<4x128xf32> to vector<4xf32>
    %30 = vector.shape_cast %29 : vector<4xf32> to vector<4x1xf32>
    %cst_5 = arith.constant 3.125000e-02 : f32
    %31 = vector.broadcast %cst_5 : f32 to vector<4x1xf32>
    %32 = arith.mulf %30, %31 : vector<4x1xf32>
    %33 = vector.broadcast %26 : vector<1x128xf32> to vector<4x128xf32>
    %34 = vector.broadcast %32 : vector<4x1xf32> to vector<4x128xf32>
    %35 = arith.mulf %33, %34 : vector<4x128xf32>
    %36 = arith.addf %19, %35 : vector<4x128xf32>
    %c64_i32_6 = arith.constant 64 : i32
    %37 = vector.broadcast %c64_i32_6 : i32 to vector<1x128xi32>
    %38 = arith.cmpi sge, %1, %37 : vector<1x128xi32>
    %c96_i32 = arith.constant 96 : i32
    %39 = vector.broadcast %c96_i32 : i32 to vector<1x128xi32>
    %40 = arith.cmpi slt, %1, %39 : vector<1x128xi32>
    %41 = arith.andi %38, %40 : vector<1x128xi1>
    %42 = arith.extui %41 : vector<1x128xi1> to vector<1x128xi32>
    %43 = arith.sitofp %42 : vector<1x128xi32> to vector<1x128xf32>
    %44 = vector.broadcast %43 : vector<1x128xf32> to vector<4x128xf32>
    %45 = arith.mulf %0, %44 : vector<4x128xf32>
    %cst_7 = arith.constant dense<0.000000e+00> : vector<4xf32>
    %46 = vector.multi_reduction <add>, %45, %cst_7 [1] : vector<4x128xf32> to vector<4xf32>
    %47 = vector.shape_cast %46 : vector<4xf32> to vector<4x1xf32>
    %cst_8 = arith.constant 3.125000e-02 : f32
    %48 = vector.broadcast %cst_8 : f32 to vector<4x1xf32>
    %49 = arith.mulf %47, %48 : vector<4x1xf32>
    %50 = vector.broadcast %43 : vector<1x128xf32> to vector<4x128xf32>
    %51 = vector.broadcast %49 : vector<4x1xf32> to vector<4x128xf32>
    %52 = arith.mulf %50, %51 : vector<4x128xf32>
    %53 = arith.addf %36, %52 : vector<4x128xf32>
    %c96_i32_9 = arith.constant 96 : i32
    %54 = vector.broadcast %c96_i32_9 : i32 to vector<1x128xi32>
    %55 = arith.cmpi sge, %1, %54 : vector<1x128xi32>
    %c128_i32 = arith.constant 128 : i32
    %56 = vector.broadcast %c128_i32 : i32 to vector<1x128xi32>
    %57 = arith.cmpi slt, %1, %56 : vector<1x128xi32>
    %58 = arith.andi %55, %57 : vector<1x128xi1>
    %59 = arith.extui %58 : vector<1x128xi1> to vector<1x128xi32>
    %60 = arith.sitofp %59 : vector<1x128xi32> to vector<1x128xf32>
    %61 = vector.broadcast %60 : vector<1x128xf32> to vector<4x128xf32>
    %62 = arith.mulf %0, %61 : vector<4x128xf32>
    %cst_10 = arith.constant dense<0.000000e+00> : vector<4xf32>
    %63 = vector.multi_reduction <add>, %62, %cst_10 [1] : vector<4x128xf32> to vector<4xf32>
    %64 = vector.shape_cast %63 : vector<4xf32> to vector<4x1xf32>
    %cst_11 = arith.constant 3.125000e-02 : f32
    %65 = vector.broadcast %cst_11 : f32 to vector<4x1xf32>
    %66 = arith.mulf %64, %65 : vector<4x1xf32>
    %67 = vector.broadcast %60 : vector<1x128xf32> to vector<4x128xf32>
    %68 = vector.broadcast %66 : vector<4x1xf32> to vector<4x128xf32>
    %69 = arith.mulf %67, %68 : vector<4x128xf32>
    %70 = arith.addf %53, %69 : vector<4x128xf32>
    %71 = arith.subf %0, %70 : vector<4x128xf32>
    %72 = arith.mulf %71, %71 : vector<4x128xf32>
    %cst_12 = arith.constant 0.000000e+00 : f32
    %73 = vector.broadcast %cst_12 : f32 to vector<4x128xf32>
    %c0_i32_13 = arith.constant 0 : i32
    %74 = vector.broadcast %c0_i32_13 : i32 to vector<1x128xi32>
    %75 = arith.cmpi sge, %1, %74 : vector<1x128xi32>
    %c32_i32_14 = arith.constant 32 : i32
    %76 = vector.broadcast %c32_i32_14 : i32 to vector<1x128xi32>
    %77 = arith.cmpi slt, %1, %76 : vector<1x128xi32>
    %78 = arith.andi %75, %77 : vector<1x128xi1>
    %79 = arith.extui %78 : vector<1x128xi1> to vector<1x128xi32>
    %80 = arith.sitofp %79 : vector<1x128xi32> to vector<1x128xf32>
    %81 = vector.broadcast %80 : vector<1x128xf32> to vector<4x128xf32>
    %82 = arith.mulf %72, %81 : vector<4x128xf32>
    %cst_15 = arith.constant dense<0.000000e+00> : vector<4xf32>
    %83 = vector.multi_reduction <add>, %82, %cst_15 [1] : vector<4x128xf32> to vector<4xf32>
    %84 = vector.shape_cast %83 : vector<4xf32> to vector<4x1xf32>
    %cst_16 = arith.constant 3.125000e-02 : f32
    %85 = vector.broadcast %cst_16 : f32 to vector<4x1xf32>
    %86 = arith.mulf %84, %85 : vector<4x1xf32>
    %87 = vector.broadcast %80 : vector<1x128xf32> to vector<4x128xf32>
    %88 = vector.broadcast %86 : vector<4x1xf32> to vector<4x128xf32>
    %89 = arith.mulf %87, %88 : vector<4x128xf32>
    %90 = arith.addf %73, %89 : vector<4x128xf32>
    %c32_i32_17 = arith.constant 32 : i32
    %91 = vector.broadcast %c32_i32_17 : i32 to vector<1x128xi32>
    %92 = arith.cmpi sge, %1, %91 : vector<1x128xi32>
    %c64_i32_18 = arith.constant 64 : i32
    %93 = vector.broadcast %c64_i32_18 : i32 to vector<1x128xi32>
    %94 = arith.cmpi slt, %1, %93 : vector<1x128xi32>
    %95 = arith.andi %92, %94 : vector<1x128xi1>
    %96 = arith.extui %95 : vector<1x128xi1> to vector<1x128xi32>
    %97 = arith.sitofp %96 : vector<1x128xi32> to vector<1x128xf32>
    %98 = vector.broadcast %97 : vector<1x128xf32> to vector<4x128xf32>
    %99 = arith.mulf %72, %98 : vector<4x128xf32>
    %cst_19 = arith.constant dense<0.000000e+00> : vector<4xf32>
    %100 = vector.multi_reduction <add>, %99, %cst_19 [1] : vector<4x128xf32> to vector<4xf32>
    %101 = vector.shape_cast %100 : vector<4xf32> to vector<4x1xf32>
    %cst_20 = arith.constant 3.125000e-02 : f32
    %102 = vector.broadcast %cst_20 : f32 to vector<4x1xf32>
    %103 = arith.mulf %101, %102 : vector<4x1xf32>
    %104 = vector.broadcast %97 : vector<1x128xf32> to vector<4x128xf32>
    %105 = vector.broadcast %103 : vector<4x1xf32> to vector<4x128xf32>
    %106 = arith.mulf %104, %105 : vector<4x128xf32>
    %107 = arith.addf %90, %106 : vector<4x128xf32>
    %c64_i32_21 = arith.constant 64 : i32
    %108 = vector.broadcast %c64_i32_21 : i32 to vector<1x128xi32>
    %109 = arith.cmpi sge, %1, %108 : vector<1x128xi32>
    %c96_i32_22 = arith.constant 96 : i32
    %110 = vector.broadcast %c96_i32_22 : i32 to vector<1x128xi32>
    %111 = arith.cmpi slt, %1, %110 : vector<1x128xi32>
    %112 = arith.andi %109, %111 : vector<1x128xi1>
    %113 = arith.extui %112 : vector<1x128xi1> to vector<1x128xi32>
    %114 = arith.sitofp %113 : vector<1x128xi32> to vector<1x128xf32>
    %115 = vector.broadcast %114 : vector<1x128xf32> to vector<4x128xf32>
    %116 = arith.mulf %72, %115 : vector<4x128xf32>
    %cst_23 = arith.constant dense<0.000000e+00> : vector<4xf32>
    %117 = vector.multi_reduction <add>, %116, %cst_23 [1] : vector<4x128xf32> to vector<4xf32>
    %118 = vector.shape_cast %117 : vector<4xf32> to vector<4x1xf32>
    %cst_24 = arith.constant 3.125000e-02 : f32
    %119 = vector.broadcast %cst_24 : f32 to vector<4x1xf32>
    %120 = arith.mulf %118, %119 : vector<4x1xf32>
    %121 = vector.broadcast %114 : vector<1x128xf32> to vector<4x128xf32>
    %122 = vector.broadcast %120 : vector<4x1xf32> to vector<4x128xf32>
    %123 = arith.mulf %121, %122 : vector<4x128xf32>
    %124 = arith.addf %107, %123 : vector<4x128xf32>
    %c96_i32_25 = arith.constant 96 : i32
    %125 = vector.broadcast %c96_i32_25 : i32 to vector<1x128xi32>
    %126 = arith.cmpi sge, %1, %125 : vector<1x128xi32>
    %c128_i32_26 = arith.constant 128 : i32
    %127 = vector.broadcast %c128_i32_26 : i32 to vector<1x128xi32>
    %128 = arith.cmpi slt, %1, %127 : vector<1x128xi32>
    %129 = arith.andi %126, %128 : vector<1x128xi1>
    %130 = arith.extui %129 : vector<1x128xi1> to vector<1x128xi32>
    %131 = arith.sitofp %130 : vector<1x128xi32> to vector<1x128xf32>
    %132 = vector.broadcast %131 : vector<1x128xf32> to vector<4x128xf32>
    %133 = arith.mulf %72, %132 : vector<4x128xf32>
    %cst_27 = arith.constant dense<0.000000e+00> : vector<4xf32>
    %134 = vector.multi_reduction <add>, %133, %cst_27 [1] : vector<4x128xf32> to vector<4xf32>
    %135 = vector.shape_cast %134 : vector<4xf32> to vector<4x1xf32>
    %cst_28 = arith.constant 3.125000e-02 : f32
    %136 = vector.broadcast %cst_28 : f32 to vector<4x1xf32>
    %137 = arith.mulf %135, %136 : vector<4x1xf32>
    %138 = vector.broadcast %131 : vector<1x128xf32> to vector<4x128xf32>
    %139 = vector.broadcast %137 : vector<4x1xf32> to vector<4x128xf32>
    %140 = arith.mulf %138, %139 : vector<4x128xf32>
    %141 = arith.addf %124, %140 : vector<4x128xf32>
    %cst_29 = arith.constant 9.99999974E-6 : f32
    %142 = vector.broadcast %cst_29 : f32 to vector<4x128xf32>
    %143 = arith.addf %141, %142 : vector<4x128xf32>
    %144 = math.rsqrt %143 : vector<4x128xf32>
    %145 = arith.mulf %71, %144 : vector<4x128xf32>
    %c0_30 = arith.constant 0 : index
    %c0_31 = arith.constant 0 : index
    %146 = vector.load %arg2[%c0_30, %c0_31] : memref<1x128xf32, #tpu.memory_space<vmem>>, vector<1x128xf32>
    %c0_32 = arith.constant 0 : index
    %c0_33 = arith.constant 0 : index
    %147 = vector.load %arg3[%c0_32, %c0_33] : memref<1x128xf32, #tpu.memory_space<vmem>>, vector<1x128xf32>
    %148 = vector.broadcast %146 : vector<1x128xf32> to vector<4x128xf32>
    %149 = arith.mulf %148, %145 : vector<4x128xf32>
    %150 = vector.broadcast %147 : vector<1x128xf32> to vector<4x128xf32>
    %151 = arith.addf %149, %150 : vector<4x128xf32>
    %c0_34 = arith.constant 0 : index
    %c0_35 = arith.constant 0 : index
    %152 = vector.load %arg4[%c0_34, %c0_35] : memref<4x128xf32, #tpu.memory_space<vmem>>, vector<4x128xf32>
    tpu.vector_store %arg4[%c0_34, %c0_35], %151 {strides = array<i32>} : memref<4x128xf32, #tpu.memory_space<vmem>>, vector<4x128xf32>,
    return
  }
  func.func @transform_0(%arg0: i32) -> (i32, i32) {
    %c0_i32 = arith.constant 0 : i32
    %c0_i32_0 = arith.constant 0 : i32
    return %arg0, %c0_i32 : i32, i32
  }
  func.func @transform_1(%arg0: i32) -> (i32, i32) {
    %c0_i32 = arith.constant 0 : i32
    %c0_i32_0 = arith.constant 0 : i32
    %c0_i32_1 = arith.constant 0 : i32
    return %c0_i32, %c0_i32_0 : i32, i32
  }
  func.func @transform_2(%arg0: i32) -> (i32, i32) {
    %c0_i32 = arith.constant 0 : i32
    %c0_i32_0 = arith.constant 0 : i32
    %c0_i32_1 = arith.constant 0 : i32
    return %c0_i32, %c0_i32_0 : i32, i32
  }
  func.func @transform_3(%arg0: i32) -> (i32, i32) {
    %c0_i32 = arith.constant 0 : i32
    %c0_i32_0 = arith.constant 0 : i32
    return %arg0, %c0_i32 : i32, i32
  }
}

</mosaic_0001>

<bundles_post_ra>
// kernel: tpu_custom_call.1
= control target key start
LH: loop header
LB: loop body
LE: loop exit
PB: predicated region body
PF: predicated region fallthrough
CT: control target
= control target key end

     0   :  { %8 = vsyncpa [#allocation3], 0  ;;  %s264_s0 = inlined_call_operand.hbm [shape: f32[4,128], index: 0, kind: input, shape index: {}]   ;;  %s265_s1 = inlined_call_operand.vmem [shape: f32[1,128], index: 1, kind: input, shape index: {}]   ;;  %s266_s2 = inlined_call_operand.vmem [shape: f32[1,128], index: 2, kind: input, shape index: {}]   ;;  %s267_s3 = inlined_call_operand.hbm [shape: f32[4,128], index: 3, kind: output, shape index: {}]  }
   0x1   :  { %9 = vsyncpa [#allocation4], 0  ;;  %s203_s12 = smov [#allocation2]   ;;  %s155_s16 = scalar_lea.hbm %s264_s0, 64 }
   0x2   :  { %s16_s13 = sshll.u32 %s203_s12, 4  ;;  %p156_p0 = scmp.ne.s32.totalorder %s264_s0, %s155_s16  ;;  %s17_s13 = int_to_ptr.vmem [resolvable:$true] %s16_s13 }
   0x3   :  { %p159_p1 = scmp.lt.u32.totalorder %s155_s16, %s264_s0 }
   0x5   :  { %p161_p2 = pnand %p159_p1, %p156_p0 }
   0x7   :  { %164 = shalt.err (!%p161_p2)
}
   0x8   :  { %s165_s21 = scalar_lea.vmem %s17_s13, 64  ;;  %p170_p4 = scmp.lt.s32.totalorder %s17_s13, %s17_s13 }
   0x9   :  { %p166_p3 = scmp.ne.s32.totalorder %s17_s13, %s165_s21  ;;  %p171_p5 = scmp.lt.s32.totalorder %s165_s21, %s165_s21 }
   0xb   :  { %p172_p6 = por %p171_p5, %p170_p4 }
   0xd   :  { %p173_p7 = pnand %p172_p6, %p166_p3 }
   0xf   :  { %176 = shalt.err (!%p173_p7)
}
  0x10   :  { %19 = dma.hbm_to_vmem [thread:$0]  %s264_s0, 64, %s17_s13, [#allocation3]  }
  0x11   :  { %199 = dma.done.wait [#allocation3], 64  }
  0x12   :  { %200 = vsyncadd [#allocation3], 4294967232  ;;  %v28_v0 = vlaneseq  ;;  %v204_v2 = vmov 0.0   ;;  %v27_v6 = vld [vmem:[#allocation2] sm:$0xf]  ;;  %vm36_vm8 = vcmask 1043456  }
  0x13   :  { %v148_v58 = vld [vmem:[%s265_s1] ss:$0 sm:$0xff]  ;;  %s205_s27 = smov [#allocation5]  }
  0x14   :  { %v29_v1 = vand.u32 127, %v28_v0  ;;  %v149_v60 = vld [vmem:[%s266_s2] ss:$0 sm:$0xff]  ;;  %s135_s28 = sshll.u32 %s205_s27, 4  ;;  %s136_s28 = int_to_ptr.vmem [resolvable:$true] %s135_s28 }
  0x15   :  { %s177_s29 = scalar_lea.vmem %s136_s28, 64  ;;  %p182_p9 = scmp.lt.s32.totalorder %s136_s28, %s136_s28 }
  0x16   :  { %vm31_vm0 = vcmp.lt.s32.totalorder %v29_v1, 32  ;;  %vm55_vm1 = vcmp.ge.s32.totalorder %v29_v1, 64  ;;  %vm56_vm2 = vcmp.lt.s32.totalorder %v29_v1, 96  ;;  %vm43_vm3 = vcmp.ge.s32.totalorder %v29_v1, 32  ;;  %p178_p8 = scmp.ne.s32.totalorder %s136_s28, %s177_s29  ;;  %p183_p10 = scmp.lt.s32.totalorder %s177_s29, %s177_s29 }
  0x17   :  { %v144_v3 = vsel %vm31_vm0, 1.0, %v204_v2  ;;  %vm57_vm4 = vmand %vm55_vm1, %vm56_vm2  ;;  %vm44_vm5 = vcmp.lt.s32.totalorder %v29_v1, 64  ;;  %vm67_vm6 = vcmp.ge.s32.totalorder %v29_v1, 96 }
  0x18   :  { %v146_v4 = vsel %vm57_vm4, 1.0, %v204_v2  ;;  %vm45_vm7 = vmand %vm43_vm3, %vm44_vm5  ;;  %v147_v5 = vsel %vm67_vm6, 1.0, %v204_v2  ;;  %v35_v8 = vmul.f32 %v144_v3, %v27_v6  ;;  %p184_p11 = por %p183_p10, %p182_p9 }
  0x19   :  { %v145_v7 = vsel %vm45_vm7, 1.0, %v204_v2  ;;  %v60_v9 = vmul.f32 %v146_v4, %v27_v6  ;;  %v72_v11 = vmul.f32 %v147_v5, %v27_v6 }
  0x1a   :  { %v48_v10 = vmul.f32 %v145_v7, %v27_v6  ;;  %v37_v12 = vsel %vm36_vm8, %v35_v8, 0.0  ;;  %p185_p12 = pnand %p184_p11, %p178_p8 }
  0x1b   :  { %v61_v13 = vsel %vm36_vm8, %v60_v9, 0.0  ;;  %38 = vadd.xlane.f32.xlu0 %v37_v12  ;;  %v73_v15 = vsel %vm36_vm8, %v72_v11, 0.0 }
  0x1c   :  { %62 = vadd.xlane.f32.xlu1 %v61_v13  ;;  %v49_v14 = vsel %vm36_vm8, %v48_v10, 0.0 }
  0x1f   :  { %50 = vadd.xlane.f32.xlu0 %v49_v14 }
  0x20   :  { %74 = vadd.xlane.f32.xlu1 %v73_v15 }
  0xa8   :  { %v39_v16 = vpop.xlane.xlu0 %38 }
  0xa9   :  { %v63_v17 = vpop.xlane.xlu1 %62  ;;  %v40_v18 = vmul.f32 0.03125, %v39_v16 }
  0xaa   :  { %v64_v21 = vmul.f32 0.03125, %v63_v17 }
  0xab   :  { %v41_v24 = vmul.f32 %v144_v3, %v40_v18 }
  0xac   :  { %v51_v19 = vpop.xlane.xlu0 %50  ;;  %v65_v26 = vmul.f32 %v146_v4, %v64_v21 }
  0xad   :  { %v75_v20 = vpop.xlane.xlu1 %74  ;;  %v52_v22 = vmul.f32 0.03125, %v51_v19 }
  0xae   :  { %v76_v23 = vmul.f32 0.03125, %v75_v20 }
  0xaf   :  { %v53_v25 = vmul.f32 %v145_v7, %v52_v22 }
  0xb0   :  { %v77_v28 = vmul.f32 %v147_v5, %v76_v23 }
  0xb1   :  { %v54_v27 = vadd.f32 %v53_v25, %v41_v24 }
  0xb3   :  { %v66_v29 = vadd.f32 %v65_v26, %v54_v27 }
  0xb5   :  { %v78_v30 = vadd.f32 %v77_v28, %v66_v29 }
  0xb7   :  { %v79_v31 = vsub.f32 %v27_v6, %v78_v30 }
  0xb9   :  { %v80_v32 = vmul.f32 %v79_v31, %v79_v31 }
  0xbb   :  { %v88_v33 = vmul.f32 %v145_v7, %v80_v32  ;;  %v81_v34 = vmul.f32 %v144_v3, %v80_v32  ;;  %v102_v37 = vmul.f32 %v147_v5, %v80_v32  ;;  %v95_v38 = vmul.f32 %v146_v4, %v80_v32 }
  0xbd   :  { %v89_v35 = vsel %vm36_vm8, %v88_v33, 0.0  ;;  %v82_v36 = vsel %vm36_vm8, %v81_v34, 0.0  ;;  %v103_v39 = vsel %vm36_vm8, %v102_v37, 0.0  ;;  %v96_v40 = vsel %vm36_vm8, %v95_v38, 0.0 }
  0xbe   :  { %90 = vadd.xlane.f32.xlu1 %v89_v35  ;;  %83 = vadd.xlane.f32.xlu0 %v82_v36 }
  0xc2   :  { %104 = vadd.xlane.f32.xlu1 %v103_v39  ;;  %97 = vadd.xlane.f32.xlu0 %v96_v40 }
 0x14b   :  { %v91_v41 = vpop.xlane.xlu1 %90  ;;  %v84_v42 = vpop.xlane.xlu0 %83 }
 0x14c   :  { %v92_v43 = vmul.f32 0.03125, %v91_v41  ;;  %v85_v44 = vmul.f32 0.03125, %v84_v42 }
 0x14e   :  { %v93_v45 = vmul.f32 %v145_v7, %v92_v43  ;;  %v86_v46 = vmul.f32 %v144_v3, %v85_v44 }
 0x14f   :  { %v105_v47 = vpop.xlane.xlu1 %104  ;;  %v98_v48 = vpop.xlane.xlu0 %97 }
 0x150   :  { %v106_v49 = vmul.f32 0.03125, %v105_v47  ;;  %v99_v50 = vmul.f32 0.03125, %v98_v48  ;;  %v94_v51 = vadd.f32 %v93_v45, %v86_v46 }
 0x152   :  { %v100_v52 = vmul.f32 %v146_v4, %v99_v50  ;;  %v107_v53 = vmul.f32 %v147_v5, %v106_v49 }
 0x154   :  { %v101_v54 = vadd.f32 %v100_v52, %v94_v51 }
 0x156   :  { %v108_v55 = vadd.f32 %v107_v53, %v101_v54 }
 0x158   :  { %v109_v56 = vadd.f32 1e-05, %v108_v55 }
 0x15a   :  { %153 = vrsqrt.f32 %v109_v56 }
 0x164   :  { %v154_v57 = vpop.eup %153 }
 0x165   :  { %v111_v59 = vmul.f32 %v154_v57, %v79_v31 }
 0x167   :  { %v120_v61 = vmul.f32 %v148_v58, %v111_v59 }
 0x169   :  { %v127_v62 = vadd.f32 %v149_v60, %v120_v61 }
 0x16b   :  { %128 = vst [vmem:[#allocation5] sm:$0xf] %v127_v62 }
 0x16c   :  { %188 = shalt.err (!%p185_p12)
}
 0x16d   :  { %s189_s4 = scalar_lea.hbm %s267_s3, 64 }
 0x16e   :  { %p190_p13 = scmp.ne.s32.totalorder %s267_s3, %s189_s4  ;;  %p193_p0 = scmp.lt.u32.totalorder %s189_s4, %s267_s3 }
 0x170   :  { %p195_p1 = pnand %p193_p0, %p190_p13 }
 0x172   :  { %198 = shalt.err (!%p195_p1)
}
 0x173   :  { %138 = dma.vmem_to_hbm [thread:$0]  %s136_s28, 64, %s267_s3, [#allocation4]  }
 0x174   :  { %201 = dma.done.wait [#allocation4], 64  }
 0x175   :  { %202 = vsyncadd [#allocation4], 4294967232 }
 0x176   :  { %142 = vsyncpa [#allocation3], 1 }
 0x177   :  { %143 = vsyncpa [#allocation4], 1 }

</bundles_post_ra>
